<compile_context>
chip_gen: v7x
topology: tpu7x:2x2x1
jax: 0.10.0
libtpu: 0.0.40
codegen_flags: <defaults>
</compile_context>

<pallas_src>
import jax
import jax.numpy as jnp
from jax.experimental import pallas as pl
from jax.experimental.pallas import tpu as pltpu

_LANE_WIDTH = 512  # lane-dense last dim: large multiple of 128


def _int_power(d, n: int):
    """d**n for non-negative integer n via exponentiation by squaring (VPU only)."""
    result = None
    base = d
    while n > 0:
        if n & 1:
            result = base if result is None else result * base
        n >>= 1
        if n:
            base = base * base
    return jnp.ones_like(d) if result is None else result


def _poly_cutoff_kernel(cutoff: float, p: float, d_ref, o_ref):
    x = d_ref[...]
    inv_cutoff = 1.0 / cutoff
    d = x * inv_cutoff

    # d^p: integer squaring path when p is a non-negative integer (the usual
    # case, p=9); generic jnp.power fallback otherwise.
    if float(p).is_integer() and p >= 0:
        dp = _int_power(d, int(p))
    else:
        dp = jnp.power(d, p)

    # Horner-factored polynomial: c = 1 + d^p * (A + d*(B + d*C))
    A = -0.5 * (p + 1.0) * (p + 2.0)
    B = p * (p + 2.0)
    C = -0.5 * p * (p + 1.0)
    c = 1.0 + dp * (A + d * (B + d * C))

    o_ref[...] = jnp.where(x < cutoff, c, jnp.zeros_like(c))


def polynomial_cutoff(distances: jax.Array, cutoff: float = 5.0, p: float = 9.0,
                      *, tile_rows: int = 1024) -> jax.Array:
    """Elementwise polynomial cutoff; accepts any shape, returns same shape."""
    orig_shape = distances.shape
    flat = distances.reshape(-1)
    n = flat.shape[0]

    # Lane-dense 2D slab: pad flat length to a multiple of _LANE_WIDTH.
    rows = pl.cdiv(n, _LANE_WIDTH)

    # Effective row tile: full extent for small inputs; otherwise pad the row
    # count up to a multiple of tile_rows so every block is full and aligned.
    if rows <= tile_rows:
        tr = rows
        padded_rows = rows
    else:
        tr = tile_rows
        padded_rows = pl.cdiv(rows, tr) * tr

    padded_n = padded_rows * _LANE_WIDTH
    if padded_n != n:
        flat = jnp.pad(flat, (0, padded_n - n))
    x2d = flat.reshape(padded_rows, _LANE_WIDTH)

    grid = (padded_rows // tr,)
    kernel = lambda d_ref, o_ref: _poly_cutoff_kernel(float(cutoff), float(p),
                                                      d_ref, o_ref)

    out2d = pl.pallas_call(
        kernel,
        out_shape=jax.ShapeDtypeStruct((padded_rows, _LANE_WIDTH), distances.dtype),
        grid_spec=pltpu.PrefetchScalarGridSpec(
            num_scalar_prefetch=0,
            grid=grid,
            in_specs=[pl.BlockSpec((tr, _LANE_WIDTH), lambda i: (i, 0))],
            out_specs=pl.BlockSpec((tr, _LANE_WIDTH), lambda i: (i, 0)),
        ),
        compiler_params=pltpu.CompilerParams(
            dimension_semantics=("parallel",),
            vmem_limit_bytes=32 << 20,  # headroom for double-buffered ~2 MiB blocks
        ),
    )(x2d)

    return out2d.reshape(-1)[:n].reshape(orig_shape)


def _reference(distances, cutoff=5.0, p=9.0):
    d = distances / cutoff
    c = (1.0
         - 0.5 * (p + 1.0) * (p + 2.0) * jnp.power(d, p)
         + p * (p + 2.0) * jnp.power(d, p + 1.0)
         - 0.5 * p * (p + 1.0) * jnp.power(d, p + 2.0))
    return c * (distances < cutoff).astype(jnp.float32)


if __name__ == "__main__":
    key = jax.random.PRNGKey(0)
    k1, k2 = jax.random.split(key)

    # Small, module-consistent shapes: per-edge distances, values in [0, 8)
    # so both sides of the cutoff (5.0) are exercised.
    x_a = jax.random.uniform(k1, (128, 128), dtype=jnp.float32) * 8.0
    x_b = jax.random.uniform(k2, (300, 7), dtype=jnp.float32) * 8.0  # ragged shape

    for x in (x_a, x_b):
        out = polynomial_cutoff(x, cutoff=5.0, p=9.0)
        out = jax.block_until_ready(out)
        ref = _reference(x, cutoff=5.0, p=9.0)
        assert out.shape == ref.shape and out.dtype == ref.dtype
        assert jnp.allclose(out, ref, atol=1e-4, rtol=1e-4), "mismatch vs reference"

    print("KERNEL_OK")
</pallas_src>

<mosaic_0001>
module attributes {stable_mosaic.version = 11 : i64} {
  func.func @_lambda_(%arg0: i32, %arg1: memref<32x512xf32, #tpu.memory_space<vmem>>, %arg2: memref<32x512xf32, #tpu.memory_space<vmem>>) attributes {dimension_semantics = [#tpu.dimension_semantics<parallel>], iteration_bounds = array<i64: 1>, scalar_prefetch = 0 : i64, scratch_operands = 0 : i64, tpu.core_type = #tpu.core_type<tc>, window_params = [{transform_indices = @transform_0, window_bounds = array<i64: 32, 512>}, {transform_indices = @transform_1, window_bounds = array<i64: 32, 512>}]} {
    %c0 = arith.constant 0 : index
    %c0_0 = arith.constant 0 : index
    %0 = vector.load %arg1[%c0, %c0_0] : memref<32x512xf32, #tpu.memory_space<vmem>>, vector<32x512xf32>
    %cst = arith.constant 2.000000e-01 : f32
    %1 = vector.broadcast %cst : f32 to vector<32x512xf32>
    %2 = arith.mulf %0, %1 : vector<32x512xf32>
    %3 = arith.mulf %2, %2 : vector<32x512xf32>
    %4 = arith.mulf %3, %3 : vector<32x512xf32>
    %5 = arith.mulf %4, %4 : vector<32x512xf32>
    %6 = arith.mulf %2, %5 : vector<32x512xf32>
    %cst_1 = arith.constant -4.500000e+01 : f32
    %7 = vector.broadcast %cst_1 : f32 to vector<32x512xf32>
    %8 = arith.mulf %2, %7 : vector<32x512xf32>
    %cst_2 = arith.constant 9.900000e+01 : f32
    %9 = vector.broadcast %cst_2 : f32 to vector<32x512xf32>
    %10 = arith.addf %9, %8 : vector<32x512xf32>
    %11 = arith.mulf %2, %10 : vector<32x512xf32>
    %cst_3 = arith.constant -5.500000e+01 : f32
    %12 = vector.broadcast %cst_3 : f32 to vector<32x512xf32>
    %13 = arith.addf %12, %11 : vector<32x512xf32>
    %14 = arith.mulf %6, %13 : vector<32x512xf32>
    %cst_4 = arith.constant 1.000000e+00 : f32
    %15 = vector.broadcast %cst_4 : f32 to vector<32x512xf32>
    %16 = arith.addf %15, %14 : vector<32x512xf32>
    %cst_5 = arith.constant 5.000000e+00 : f32
    %17 = vector.broadcast %cst_5 : f32 to vector<32x512xf32>
    %18 = arith.cmpf olt, %0, %17 : vector<32x512xf32>
    %cst_6 = arith.constant 0.000000e+00 : f32
    %19 = vector.broadcast %cst_6 : f32 to vector<32x512xf32>
    %20 = arith.select %18, %16, %19 : vector<32x512xi1>, vector<32x512xf32>
    %c0_7 = arith.constant 0 : index
    %c0_8 = arith.constant 0 : index
    %21 = vector.load %arg2[%c0_7, %c0_8] : memref<32x512xf32, #tpu.memory_space<vmem>>, vector<32x512xf32>
    tpu.vector_store %arg2[%c0_7, %c0_8], %20 {strides = array<i32>} : memref<32x512xf32, #tpu.memory_space<vmem>>, vector<32x512xf32>,
    return
  }
  func.func @transform_0(%arg0: i32) -> (i32, i32) {
    %c0_i32 = arith.constant 0 : i32
    %c0_i32_0 = arith.constant 0 : i32
    return %arg0, %c0_i32 : i32, i32
  }
  func.func @transform_1(%arg0: i32) -> (i32, i32) {
    %c0_i32 = arith.constant 0 : i32
    %c0_i32_0 = arith.constant 0 : i32
    return %arg0, %c0_i32 : i32, i32
  }
}

</mosaic_0001>

<bundles_post_ra>
// kernel: tpu_custom_call.1
= control target key start
LH: loop header
LB: loop body
LE: loop exit
PB: predicated region body
PF: predicated region fallthrough
CT: control target
= control target key end

     0   :  { %6 = vsyncpa [#allocation3], 0  ;;  %s448_s0 = inlined_call_operand.hbm [shape: f32[32,512], index: 0, kind: input, shape index: {}]   ;;  %s449_s1 = inlined_call_operand.hbm [shape: f32[32,512], index: 1, kind: output, shape index: {}]  }
   0x1   :  { %7 = vsyncpa [#allocation4], 0  ;;  %s332_s6 = smov [#allocation2]   ;;  %s284_s10 = scalar_lea.hbm %s448_s0, 2048 }
   0x2   :  { %s13_s7 = sshll.u32 %s332_s6, 4  ;;  %p285_p0 = scmp.ne.s32.totalorder %s448_s0, %s284_s10  ;;  %s14_s7 = int_to_ptr.vmem [resolvable:$true] %s13_s7 }
   0x3   :  { %p288_p1 = scmp.lt.u32.totalorder %s284_s10, %s448_s0 }
   0x5   :  { %p290_p2 = pnand %p288_p1, %p285_p0 }
   0x7   :  { %293 = shalt.err (!%p290_p2)
}
   0x8   :  { %s294_s15 = scalar_lea.vmem %s14_s7, 2048  ;;  %p299_p4 = scmp.lt.s32.totalorder %s14_s7, %s14_s7 }
   0x9   :  { %p295_p3 = scmp.ne.s32.totalorder %s14_s7, %s294_s15  ;;  %p300_p5 = scmp.lt.s32.totalorder %s294_s15, %s294_s15 }
   0xb   :  { %p301_p6 = por %p300_p5, %p299_p4 }
   0xd   :  { %p302_p7 = pnand %p301_p6, %p295_p3 }
   0xf   :  { %305 = shalt.err (!%p302_p7)
}
  0x10   :  { %s333_s16 = smov 512   ;;  %s334_s17 = smov 32  }
  0x11   :  { %19 = dma.hbm_to_vmem [thread:$0]  %s448_s0, 2048, %s14_s7, [#allocation3], %s333_s16, %s333_s16, %s334_s17  }
  0x12   :  { %328 = dma.done.wait [#allocation3], 2048  }
  0x13   :  { %329 = vsyncadd [#allocation3], 4294965248  ;;  %v23_v0 = vld [vmem:[#allocation2] sm:$0xff]  ;;  %v24_v1 = vld [vmem:[#allocation2 + $0x8] sm:$0xff]  ;;  %s335_s0 = smov [#allocation5]  }
  0x14   :  { %v361_v2 = vld [vmem:[#allocation2 + $0x10] sm:$0xff]  ;;  %v39_v3 = vmul.f32 0.2, %v23_v0  ;;  %v40_v4 = vmul.f32 0.2, %v24_v1  ;;  %v364_v6 = vld [vmem:[#allocation2 + $0x18] sm:$0xff] }
  0x15   :  { %v41_v5 = vmul.f32 0.2, %v361_v2  ;;  %vm215_vm0 = vcmp.lt.f32.partialorder %v23_v0, 5.0  ;;  %vm216_vm1 = vcmp.lt.f32.partialorder %v24_v1, 5.0  ;;  %v42_v13 = vmul.f32 0.2, %v364_v6 }
  0x16   :  { %v55_v7 = vmul.f32 %v39_v3, %v39_v3  ;;  %v119_v8 = vmul.f32 -45.0, %v39_v3  ;;  %v56_v9 = vmul.f32 %v40_v4, %v40_v4  ;;  %v120_v10 = vmul.f32 -45.0, %v40_v4  ;;  %v368_v30 = vld [vmem:[#allocation2 + $0x20] sm:$0xff]  ;;  %v370_v35 = vld [vmem:[#allocation2 + $0x28] sm:$0xff]  ;;  %v375_v55 = vld [vmem:[#allocation2 + $0x30] sm:$0xff]  ;;  %s268_s20 = sshll.u32 %s335_s0, 4  ;;  %s269_s20 = int_to_ptr.vmem [resolvable:$true] %s268_s20 }
  0x17   :  { %v57_v11 = vmul.f32 %v41_v5, %v41_v5  ;;  %v121_v12 = vmul.f32 -45.0, %v41_v5  ;;  %vm217_vm2 = vcmp.lt.f32.partialorder %v361_v2, 5.0  ;;  %v58_v20 = vmul.f32 %v42_v13, %v42_v13  ;;  %s306_s21 = scalar_lea.vmem %s269_s20, 2048  ;;  %p311_p9 = scmp.lt.s32.totalorder %s269_s20, %s269_s20 }
  0x18   :  { %v71_v14 = vmul.f32 %v55_v7, %v55_v7  ;;  %v135_v15 = vadd.f32 99.0, %v119_v8  ;;  %v72_v16 = vmul.f32 %v56_v9, %v56_v9  ;;  %v136_v17 = vadd.f32 99.0, %v120_v10  ;;  %v382_v7 = vld [vmem:[#allocation2 + $0x38] sm:$0xff]  ;;  %v387_v9 = vld [vmem:[#allocation2 + $0x40] sm:$0xff]  ;;  %p307_p8 = scmp.ne.s32.totalorder %s269_s20, %s306_s21  ;;  %p312_p10 = scmp.lt.s32.totalorder %s306_s21, %s306_s21 }
  0x19   :  { %v73_v18 = vmul.f32 %v57_v11, %v57_v11  ;;  %v137_v19 = vadd.f32 99.0, %v121_v12  ;;  %v122_v21 = vmul.f32 -45.0, %v42_v13  ;;  %v74_v28 = vmul.f32 %v58_v20, %v58_v20 }
  0x1a   :  { %v87_v22 = vmul.f32 %v71_v14, %v71_v14  ;;  %v151_v23 = vmul.f32 %v135_v15, %v39_v3  ;;  %v88_v24 = vmul.f32 %v72_v16, %v72_v16  ;;  %v152_v25 = vmul.f32 %v136_v17, %v40_v4  ;;  %p313_p11 = por %p312_p10, %p311_p9 }
  0x1b   :  { %v89_v26 = vmul.f32 %v73_v18, %v73_v18  ;;  %v153_v27 = vmul.f32 %v137_v19, %v41_v5  ;;  %v138_v29 = vadd.f32 99.0, %v122_v21  ;;  %v90_v38 = vmul.f32 %v74_v28, %v74_v28 }
  0x1c   :  { %v103_v31 = vmul.f32 %v87_v22, %v39_v3  ;;  %v167_v32 = vadd.f32 -55.0, %v151_v23  ;;  %v104_v33 = vmul.f32 %v88_v24, %v40_v4  ;;  %v168_v34 = vadd.f32 -55.0, %v152_v25  ;;  %p314_p12 = pnand %p313_p11, %p307_p8 }
  0x1d   :  { %v105_v36 = vmul.f32 %v89_v26, %v41_v5  ;;  %v169_v37 = vadd.f32 -55.0, %v153_v27  ;;  %v154_v39 = vmul.f32 %v138_v29, %v42_v13  ;;  %vm218_vm3 = vcmp.lt.f32.partialorder %v364_v6, 5.0 }
  0x1e   :  { %v183_v40 = vmul.f32 %v167_v32, %v103_v31  ;;  %v184_v41 = vmul.f32 %v168_v34, %v104_v33  ;;  %v43_v42 = vmul.f32 0.2, %v368_v30  ;;  %v106_v44 = vmul.f32 %v90_v38, %v42_v13  ;;  %v393_v31 = vld [vmem:[#allocation2 + $0x48] sm:$0xff] }
  0x1f   :  { %v185_v43 = vmul.f32 %v169_v37, %v105_v36  ;;  %v170_v45 = vadd.f32 -55.0, %v154_v39  ;;  %v44_v46 = vmul.f32 0.2, %v370_v35  ;;  %v45_v5 = vmul.f32 0.2, %v375_v55  ;;  %v397_v37 = vld [vmem:[#allocation2 + $0x50] sm:$0xff] }
  0x20   :  { %v199_v47 = vadd.f32 1.0, %v183_v40  ;;  %v200_v48 = vadd.f32 1.0, %v184_v41  ;;  %v59_v49 = vmul.f32 %v43_v42, %v43_v42  ;;  %v123_v50 = vmul.f32 -45.0, %v43_v42 }
  0x21   :  { %v201_v51 = vadd.f32 1.0, %v185_v43  ;;  %v186_v52 = vmul.f32 %v170_v45, %v106_v44  ;;  %v60_v53 = vmul.f32 %v44_v46, %v44_v46  ;;  %v124_v54 = vmul.f32 -45.0, %v44_v46 }
  0x22   :  { %v231_v56 = vsel %vm215_vm0, %v199_v47, 0.0  ;;  %v232_v57 = vsel %vm216_vm1, %v200_v48, 0.0  ;;  %v75_v58 = vmul.f32 %v59_v49, %v59_v49  ;;  %v139_v59 = vadd.f32 99.0, %v123_v50 }
  0x23   :  { %247 = vst [vmem:[#allocation5] sm:$0xff] %v231_v56  ;;  %248 = vst [vmem:[#allocation5 + $0x8] sm:$0xff] %v232_v57  ;;  %v233_v60 = vsel %vm217_vm2, %v201_v51, 0.0  ;;  %v202_v61 = vadd.f32 1.0, %v186_v52  ;;  %v76_v62 = vmul.f32 %v60_v53, %v60_v53  ;;  %v140_v63 = vadd.f32 99.0, %v124_v54  ;;  %v404_v56 = vld [vmem:[#allocation2 + $0x58] sm:$0xff] }
  0x24   :  { %249 = vst [vmem:[#allocation5 + $0x10] sm:$0xff] %v233_v60  ;;  %v91_v3 = vmul.f32 %v75_v58, %v75_v58  ;;  %v155_v4 = vmul.f32 %v139_v59, %v43_v42  ;;  %vm219_vm4 = vcmp.lt.f32.partialorder %v368_v30, 5.0  ;;  %v61_v11 = vmul.f32 %v45_v5, %v45_v5 }
  0x25   :  { %v234_v0 = vsel %vm218_vm3, %v202_v61, 0.0  ;;  %v92_v1 = vmul.f32 %v76_v62, %v76_v62  ;;  %v156_v8 = vmul.f32 %v140_v63, %v44_v46  ;;  %v125_v12 = vmul.f32 -45.0, %v45_v5 }
  0x26   :  { %250 = vst [vmem:[#allocation5 + $0x18] sm:$0xff] %v234_v0  ;;  %v107_v2 = vmul.f32 %v91_v3, %v43_v42  ;;  %v171_v10 = vadd.f32 -55.0, %v155_v4  ;;  %vm220_vm5 = vcmp.lt.f32.partialorder %v370_v35, 5.0  ;;  %v46_v15 = vmul.f32 0.2, %v382_v7  ;;  %v411_v0 = vld [vmem:[#allocation2 + $0x60] sm:$0xff] }
  0x27   :  { %v108_v13 = vmul.f32 %v92_v1, %v44_v46  ;;  %v172_v14 = vadd.f32 -55.0, %v156_v8  ;;  %v77_v6 = vmul.f32 %v61_v11, %v61_v11  ;;  %v141_v17 = vadd.f32 99.0, %v125_v12 }
  0x28   :  { %v187_v16 = vmul.f32 %v171_v10, %v107_v2  ;;  %v47_v18 = vmul.f32 0.2, %v387_v9  ;;  %vm221_vm6 = vcmp.lt.f32.partialorder %v375_v55, 5.0  ;;  %v62_v20 = vmul.f32 %v46_v15, %v46_v15 }
  0x29   :  { %v188_v19 = vmul.f32 %v172_v14, %v108_v13  ;;  %v126_v21 = vmul.f32 -45.0, %v46_v15  ;;  %v93_v23 = vmul.f32 %v77_v6, %v77_v6  ;;  %v157_v24 = vmul.f32 %v141_v17, %v45_v5  ;;  %v415_v14 = vld [vmem:[#allocation2 + $0x68] sm:$0xff] }
  0x2a   :  { %v203_v22 = vadd.f32 1.0, %v187_v16  ;;  %v63_v25 = vmul.f32 %v47_v18, %v47_v18  ;;  %v78_v27 = vmul.f32 %v62_v20, %v62_v20  ;;  %v127_v29 = vmul.f32 -45.0, %v47_v18 }
  0x2b   :  { %v204_v26 = vadd.f32 1.0, %v188_v19  ;;  %v142_v28 = vadd.f32 99.0, %v126_v21  ;;  %v109_v33 = vmul.f32 %v93_v23, %v45_v5  ;;  %v173_v34 = vadd.f32 -55.0, %v157_v24 }
  0x2c   :  { %v235_v32 = vsel %vm219_vm4, %v203_v22, 0.0  ;;  %v79_v36 = vmul.f32 %v63_v25, %v63_v25  ;;  %v94_v39 = vmul.f32 %v78_v27, %v78_v27  ;;  %v143_v41 = vadd.f32 99.0, %v127_v29 }
  0x2d   :  { %251 = vst [vmem:[#allocation5 + $0x20] sm:$0xff] %v235_v32  ;;  %v236_v38 = vsel %vm220_vm5, %v204_v26, 0.0  ;;  %v158_v40 = vmul.f32 %v142_v28, %v46_v15  ;;  %v189_v42 = vmul.f32 %v173_v34, %v109_v33  ;;  %vm222_vm7 = vcmp.lt.f32.partialorder %v382_v7, 5.0  ;;  %v37_v32 = vld [vmem:[#allocation2 + $0x70] sm:$0xff] }
  0x2e   :  { %252 = vst [vmem:[#allocation5 + $0x28] sm:$0xff] %v236_v38  ;;  %v95_v43 = vmul.f32 %v79_v36, %v79_v36  ;;  %v48_v30 = vmul.f32 0.2, %v393_v31  ;;  %v110_v44 = vmul.f32 %v94_v39, %v46_v15  ;;  %v159_v46 = vmul.f32 %v143_v41, %v47_v18  ;;  %v38_v39 = vld [vmem:[#allocation2 + $0x78] sm:$0xff] }
  0x2f   :  { %v174_v45 = vadd.f32 -55.0, %v158_v40  ;;  %v49_v47 = vmul.f32 0.2, %v397_v37  ;;  %v205_v48 = vadd.f32 1.0, %v189_v42  ;;  %vm223_vm8 = vcmp.lt.f32.partialorder %v387_v9, 5.0 }
  0x30   :  { %v111_v49 = vmul.f32 %v95_v43, %v47_v18  ;;  %v64_v50 = vmul.f32 %v48_v30, %v48_v30  ;;  %v128_v35 = vmul.f32 -45.0, %v48_v30  ;;  %v175_v52 = vadd.f32 -55.0, %v159_v46 }
  0x31   :  { %v190_v51 = vmul.f32 %v174_v45, %v110_v44  ;;  %v65_v53 = vmul.f32 %v49_v47, %v49_v47  ;;  %v129_v54 = vmul.f32 -45.0, %v49_v47  ;;  %v237_v57 = vsel %vm221_vm6, %v205_v48, 0.0 }
  0x32   :  { %v80_v58 = vmul.f32 %v64_v50, %v64_v50  ;;  %v144_v59 = vadd.f32 99.0, %v128_v35  ;;  %253 = vst [vmem:[#allocation5 + $0x30] sm:$0xff] %v237_v57  ;;  %v191_v61 = vmul.f32 %v175_v52, %v111_v49  ;;  %vm224_vm9 = vcmp.lt.f32.partialorder %v393_v31, 5.0 }
  0x33   :  { %v206_v60 = vadd.f32 1.0, %v190_v51  ;;  %v81_v62 = vmul.f32 %v65_v53, %v65_v53  ;;  %v145_v63 = vadd.f32 99.0, %v129_v54  ;;  %v50_v5 = vmul.f32 0.2, %v404_v56 }
  0x34   :  { %v96_v3 = vmul.f32 %v80_v58, %v80_v58  ;;  %v160_v4 = vmul.f32 %v144_v59, %v48_v30  ;;  %v207_v1 = vadd.f32 1.0, %v191_v61  ;;  %v51_v17 = vmul.f32 0.2, %v411_v0 }
  0x35   :  { %v238_v55 = vsel %vm222_vm7, %v206_v60, 0.0  ;;  %v97_v8 = vmul.f32 %v81_v62, %v81_v62  ;;  %v161_v2 = vmul.f32 %v145_v63, %v49_v47  ;;  %v66_v12 = vmul.f32 %v50_v5, %v50_v5 }
  0x36   :  { %254 = vst [vmem:[#allocation5 + $0x38] sm:$0xff] %v238_v55  ;;  %v112_v10 = vmul.f32 %v96_v3, %v48_v30  ;;  %v176_v11 = vadd.f32 -55.0, %v160_v4  ;;  %v130_v13 = vmul.f32 -45.0, %v50_v5  ;;  %v239_v15 = vsel %vm223_vm8, %v207_v1, 0.0 }
  0x37   :  { %v113_v16 = vmul.f32 %v97_v8, %v49_v47  ;;  %v177_v6 = vadd.f32 -55.0, %v161_v2  ;;  %255 = vst [vmem:[#allocation5 + $0x40] sm:$0xff] %v239_v15  ;;  %vm225_vm10 = vcmp.lt.f32.partialorder %v397_v37, 5.0  ;;  %v82_v18 = vmul.f32 %v66_v12, %v66_v12 }
  0x38   :  { %v192_v7 = vmul.f32 %v176_v11, %v112_v10  ;;  %v146_v19 = vadd.f32 99.0, %v130_v13  ;;  %v67_v21 = vmul.f32 %v51_v17, %v51_v17  ;;  %v131_v22 = vmul.f32 -45.0, %v51_v17 }
  0x39   :  { %v193_v20 = vmul.f32 %v177_v6, %v113_v16  ;;  %v52_v23 = vmul.f32 0.2, %v415_v14  ;;  %v98_v25 = vmul.f32 %v82_v18, %v82_v18  ;;  %vm226_vm11 = vcmp.lt.f32.partialorder %v404_v56, 5.0 }
  0x3a   :  { %v208_v24 = vadd.f32 1.0, %v192_v7  ;;  %v162_v26 = vmul.f32 %v146_v19, %v50_v5  ;;  %v83_v27 = vmul.f32 %v67_v21, %v67_v21  ;;  %v147_v28 = vadd.f32 99.0, %v131_v22 }
  0x3b   :  { %v209_v9 = vadd.f32 1.0, %v193_v20  ;;  %v68_v29 = vmul.f32 %v52_v23, %v52_v23  ;;  %v114_v34 = vmul.f32 %v98_v25, %v50_v5  ;;  %v132_v38 = vmul.f32 -45.0, %v52_v23 }
  0x3c   :  { %v240_v33 = vsel %vm224_vm9, %v208_v24, 0.0  ;;  %v178_v36 = vadd.f32 -55.0, %v162_v26  ;;  %v99_v41 = vmul.f32 %v83_v27, %v83_v27  ;;  %v163_v42 = vmul.f32 %v147_v28, %v51_v17 }
  0x3d   :  { %256 = vst [vmem:[#allocation5 + $0x48] sm:$0xff] %v240_v33  ;;  %v241_v40 = vsel %vm225_vm10, %v209_v9, 0.0  ;;  %v84_v43 = vmul.f32 %v68_v29, %v68_v29  ;;  %vm227_vm12 = vcmp.lt.f32.partialorder %v411_v0, 5.0  ;;  %v148_v44 = vadd.f32 99.0, %v132_v38 }
  0x3e   :  { %257 = vst [vmem:[#allocation5 + $0x50] sm:$0xff] %v241_v40  ;;  %v194_v30 = vmul.f32 %v178_v36, %v114_v34  ;;  %v53_v45 = vmul.f32 0.2, %v37_v32  ;;  %v115_v46 = vmul.f32 %v99_v41, %v51_v17  ;;  %v179_v31 = vadd.f32 -55.0, %v163_v42 }
  0x3f   :  { %v100_v47 = vmul.f32 %v84_v43, %v84_v43  ;;  %v54_v48 = vmul.f32 0.2, %v38_v39  ;;  %v164_v50 = vmul.f32 %v148_v44, %v52_v23  ;;  %vm228_vm13 = vcmp.lt.f32.partialorder %v415_v14, 5.0 }
  0x40   :  { %v210_v49 = vadd.f32 1.0, %v194_v30  ;;  %v69_v35 = vmul.f32 %v53_v45, %v53_v45  ;;  %v133_v51 = vmul.f32 -45.0, %v53_v45  ;;  %v195_v52 = vmul.f32 %v179_v31, %v115_v46 }
  0x41   :  { %v116_v37 = vmul.f32 %v100_v47, %v52_v23  ;;  %v70_v53 = vmul.f32 %v54_v48, %v54_v48  ;;  %v134_v54 = vmul.f32 -45.0, %v54_v48  ;;  %v180_v58 = vadd.f32 -55.0, %v164_v50 }
  0x42   :  { %v242_v57 = vsel %vm226_vm11, %v210_v49, 0.0  ;;  %v85_v59 = vmul.f32 %v69_v35, %v69_v35  ;;  %v149_v60 = vadd.f32 99.0, %v133_v51  ;;  %v211_v61 = vadd.f32 1.0, %v195_v52 }
  0x43   :  { %258 = vst [vmem:[#allocation5 + $0x58] sm:$0xff] %v242_v57  ;;  %v86_v62 = vmul.f32 %v70_v53, %v70_v53  ;;  %v150_v63 = vadd.f32 99.0, %v134_v54  ;;  %v196_v3 = vmul.f32 %v180_v58, %v116_v37  ;;  %vm229_vm14 = vcmp.lt.f32.partialorder %v37_v32, 5.0 }
  0x44   :  { %v101_v4 = vmul.f32 %v85_v59, %v85_v59  ;;  %v165_v5 = vmul.f32 %v149_v60, %v53_v45  ;;  %v243_v55 = vsel %vm227_vm12, %v211_v61, 0.0  ;;  %vm230_vm15 = vcmp.lt.f32.partialorder %v38_v39, 5.0 }
  0x45   :  { %v102_v1 = vmul.f32 %v86_v62, %v86_v62  ;;  %v166_v8 = vmul.f32 %v150_v63, %v54_v48  ;;  %259 = vst [vmem:[#allocation5 + $0x60] sm:$0xff] %v243_v55  ;;  %v212_v56 = vadd.f32 1.0, %v196_v3 }
  0x46   :  { %v117_v2 = vmul.f32 %v101_v4, %v53_v45  ;;  %v181_v10 = vadd.f32 -55.0, %v165_v5 }
  0x47   :  { %v118_v11 = vmul.f32 %v102_v1, %v54_v48  ;;  %v182_v12 = vadd.f32 -55.0, %v166_v8  ;;  %v244_v13 = vsel %vm228_vm13, %v212_v56, 0.0 }
  0x48   :  { %v197_v15 = vmul.f32 %v181_v10, %v117_v2  ;;  %260 = vst [vmem:[#allocation5 + $0x68] sm:$0xff] %v244_v13 }
  0x49   :  { %v198_v16 = vmul.f32 %v182_v12, %v118_v11 }
  0x4a   :  { %v213_v6 = vadd.f32 1.0, %v197_v15 }
  0x4b   :  { %v214_v0 = vadd.f32 1.0, %v198_v16 }
  0x4c   :  { %v245_v17 = vsel %vm229_vm14, %v213_v6, 0.0 }
  0x4d   :  { %261 = vst [vmem:[#allocation5 + $0x70] sm:$0xff] %v245_v17  ;;  %v246_v14 = vsel %vm230_vm15, %v214_v0, 0.0 }
  0x4e   :  { %262 = vst [vmem:[#allocation5 + $0x78] sm:$0xff] %v246_v14 }
  0x4f   :  { %317 = shalt.err (!%p314_p12)
}
  0x50   :  { %s318_s24 = scalar_lea.hbm %s449_s1, 2048 }
  0x51   :  { %p319_p13 = scmp.ne.s32.totalorder %s449_s1, %s318_s24  ;;  %p322_p0 = scmp.lt.u32.totalorder %s318_s24, %s449_s1 }
  0x53   :  { %p324_p1 = pnand %p322_p0, %p319_p13 }
  0x55   :  { %327 = shalt.err (!%p324_p1)
}
  0x56   :  { %274 = dma.vmem_to_hbm [thread:$0]  %s269_s20, 2048, %s449_s1, [#allocation4], %s333_s16, %s333_s16, %s334_s17  }
  0x57   :  { %330 = dma.done.wait [#allocation4], 2048  }
  0x58   :  { %331 = vsyncadd [#allocation4], 4294965248 }
  0x59   :  { %278 = vsyncpa [#allocation3], 1 }
  0x5a   :  { %279 = vsyncpa [#allocation4], 1 }

</bundles_post_ra>
